<compile_context>
chip_gen: v7x
topology: tpu7x:2x2x1
jax: 0.10.0
libtpu: 0.0.40
codegen_flags: <defaults>
</compile_context>

<pallas_src>
import functools

import jax
import jax.numpy as jnp
from jax.experimental import pallas as pl
from jax.experimental.pallas import tpu as pltpu

_LANE = 128


def _round_up(n, m):
    return (n + m - 1) // m * m


def _disc_kernel(x_ref, y_ref,
                 w1_ref, b1_ref, w2_ref, b2_ref, w3_ref, b3_ref,
                 out_ref, *, true_b, tile_b):
    i = pl.program_id(0)

    # ---- MLP forward: bf16 operands into the MXU, f32 accumulation ----
    h = jnp.dot(x_ref[...], w1_ref[...],
                preferred_element_type=jnp.float32) + b1_ref[...]
    h = jnp.maximum(h, 0.0)

    h = jnp.dot(h.astype(jnp.bfloat16), w2_ref[...],
                preferred_element_type=jnp.float32) + b2_ref[...]
    h = jnp.maximum(h, 0.0)

    logits = jnp.dot(h.astype(jnp.bfloat16), w3_ref[...],
                     preferred_element_type=jnp.float32) + b3_ref[...]

    # ---- numerically stable cross-entropy per row ----
    m = jnp.max(logits, axis=-1, keepdims=True)
    lse = m + jnp.log(jnp.sum(jnp.exp(logits - m), axis=-1, keepdims=True))
    cls_idx = jax.lax.broadcasted_iota(jnp.int32, logits.shape, 1)
    onehot = (cls_idx == y_ref[...]).astype(jnp.float32)          # y: (TB, 1)
    true_logit = jnp.sum(logits * onehot, axis=-1, keepdims=True)
    per_row = lse - true_logit                                     # (TB, 1)

    # ---- mask batch-padding rows, emit this block's partial sum ----
    row = i * tile_b + jax.lax.broadcasted_iota(jnp.int32, per_row.shape, 0)
    valid = (row < true_b).astype(jnp.float32)
    partial = jnp.sum(per_row * valid)                             # scalar

    lane = jax.lax.broadcasted_iota(jnp.int32, (1, _LANE), 1)
    out_ref[...] = jnp.where(lane == 0, partial, 0.0)


def discriminator_loss(x, y, params, *, tile_b=512):
    """x: (B, input_dim) float, y: (B,) int, params: dict of MLP weights."""
    B, F = x.shape
    H1 = params["w1"].shape[1]
    H2 = params["w2"].shape[1]
    C = params["w3"].shape[1]

    Fp = _round_up(F, _LANE)
    H1p = _round_up(H1, _LANE)
    H2p = _round_up(H2, _LANE)
    Cp = _round_up(C, _LANE)

    tb = min(tile_b, _round_up(B, 8))      # batch tile (kept small for tiny B)
    Bp = _round_up(B, tb)
    nblk = Bp // tb

    # --- wrapper-side padding / casting (bf16 storage for the hot x stream) ---
    xp = jnp.zeros((Bp, Fp), jnp.bfloat16).at[:B, :F].set(x.astype(jnp.bfloat16))
    yp = jnp.zeros((Bp, 1), jnp.int32).at[:B, 0].set(y.astype(jnp.int32))

    def pad_w(w, r, c):
        return jnp.zeros((r, c), jnp.bfloat16).at[:w.shape[0], :w.shape[1]].set(
            w.astype(jnp.bfloat16))

    w1 = pad_w(params["w1"], Fp, H1p)
    w2 = pad_w(params["w2"], H1p, H2p)
    w3 = pad_w(params["w3"], H2p, Cp)
    b1 = jnp.zeros((1, H1p), jnp.float32).at[:, :H1].set(params["b1"].reshape(1, -1))
    b2 = jnp.zeros((1, H2p), jnp.float32).at[:, :H2].set(params["b2"].reshape(1, -1))
    # padded class columns get a huge negative bias -> exp() contributes 0
    b3 = jnp.full((1, Cp), -1e30, jnp.float32).at[:, :C].set(params["b3"].reshape(1, -1))

    kernel = functools.partial(_disc_kernel, true_b=B, tile_b=tb)

    def resident(shape):
        return pl.BlockSpec(shape, lambda i: (0, 0))

    flops = 2 * Bp * (Fp * H1p + H1p * H2p + H2p * Cp)
    bytes_accessed = (xp.size * 2 + yp.size * 4
                      + (w1.size + w2.size + w3.size) * 2
                      + (b1.size + b2.size + b3.size) * 4
                      + nblk * _LANE * 4)

    partials = pl.pallas_call(
        kernel,
        out_shape=jax.ShapeDtypeStruct((nblk, _LANE), jnp.float32),
        grid=(nblk,),
        in_specs=[
            pl.BlockSpec((tb, Fp), lambda i: (i, 0)),   # x tile (pipelined)
            pl.BlockSpec((tb, 1), lambda i: (i, 0)),    # y tile (pipelined)
            resident((Fp, H1p)), resident((1, H1p)),
            resident((H1p, H2p)), resident((1, H2p)),
            resident((H2p, Cp)), resident((1, Cp)),
        ],
        out_specs=pl.BlockSpec((1, _LANE), lambda i: (i, 0)),
        compiler_params=pltpu.CompilerParams(
            dimension_semantics=("parallel",),
            vmem_limit_bytes=32 * 1024 * 1024),
        cost_estimate=pl.CostEstimate(
            flops=flops,
            transcendentals=Bp * Cp,
            bytes_accessed=bytes_accessed),
    )(xp, yp, w1, b1, w2, b2, w3, b3)

    # finalize the mean over the TRUE batch size (partial blocks already masked)
    return jnp.sum(partials) / B


def init_mlp_params(key, input_dim, dnn_units, output_dim):
    """Deterministic PyTorch-Linear-style init: U(-1/sqrt(fan_in), 1/sqrt(fan_in))."""
    dims = [input_dim] + list(dnn_units) + [output_dim]
    params = {}
    for i in range(len(dims) - 1):
        fan_in, fan_out = dims[i], dims[i + 1]
        key, kw, kb = jax.random.split(key, 3)
        bound = 1.0 / (fan_in ** 0.5)
        params[f"w{i+1}"] = jax.random.uniform(
            kw, (fan_in, fan_out), jnp.float32, -bound, bound)
        params[f"b{i+1}"] = jax.random.uniform(
            kb, (1, fan_out), jnp.float32, -bound, bound)
    return params


def reference_loss(x, y, params):
    """Pure-JAX reference (with matching bf16 rounding of the matmul operands)."""
    c = lambda a: a.astype(jnp.bfloat16).astype(jnp.float32)
    h = jnp.maximum(c(x) @ c(params["w1"]) + params["b1"], 0.0)
    h = jnp.maximum(c(h) @ c(params["w2"]) + params["b2"], 0.0)
    logits = c(h) @ c(params["w3"]) + params["b3"]
    logz = jax.nn.logsumexp(logits, axis=-1)
    true = jnp.take_along_axis(logits, y.reshape(-1, 1), axis=-1)[:, 0]
    return jnp.mean(logz - true)


if __name__ == "__main__":
    B, input_dim, output_dim = 8, 32, 4
    dnn_units = [64, 32]

    key = jax.random.PRNGKey(0)
    kx, ky, kp = jax.random.split(key, 3)

    x = jax.random.normal(kx, (B, input_dim), jnp.float32)
    y = jax.random.randint(ky, (B,), 0, output_dim, jnp.int32)
    params = init_mlp_params(kp, input_dim, dnn_units, output_dim)

    loss = jax.block_until_ready(discriminator_loss(x, y, params))
    ref = jax.block_until_ready(reference_loss(x, y, params))
    assert jnp.allclose(loss, ref, atol=1e-3, rtol=1e-3), (loss, ref)

    print("KERNEL_OK")
</pallas_src>

<mosaic_0001>
module attributes {stable_mosaic.version = 11 : i64} {
  func.func @_disc_kernel(%arg0: i32, %arg1: memref<8x128xbf16, #tpu.memory_space<vmem>>, %arg2: memref<8x1xi32, #tpu.memory_space<vmem>>, %arg3: memref<128x128xbf16, #tpu.memory_space<vmem>>, %arg4: memref<1x128xf32, #tpu.memory_space<vmem>>, %arg5: memref<128x128xbf16, #tpu.memory_space<vmem>>, %arg6: memref<1x128xf32, #tpu.memory_space<vmem>>, %arg7: memref<128x128xbf16, #tpu.memory_space<vmem>>, %arg8: memref<1x128xf32, #tpu.memory_space<vmem>>, %arg9: memref<1x128xf32, #tpu.memory_space<vmem>>) attributes {dimension_semantics = [#tpu.dimension_semantics<parallel>], iteration_bounds = array<i64: 1>, scalar_prefetch = 0 : i64, scratch_operands = 0 : i64, tpu.core_type = #tpu.core_type<tc>, window_params = [{transform_indices = @transform_0, window_bounds = array<i64: 8, 128>}, {transform_indices = @transform_1, window_bounds = array<i64: 8, 1>}, {pipeline_mode = #tpu.pipeline_mode<synchronous>, transform_indices = @transform_2, window_bounds = array<i64: 128, 128>}, {pipeline_mode = #tpu.pipeline_mode<synchronous>, transform_indices = @transform_3, window_bounds = array<i64: 1, 128>}, {pipeline_mode = #tpu.pipeline_mode<synchronous>, transform_indices = @transform_4, window_bounds = array<i64: 128, 128>}, {pipeline_mode = #tpu.pipeline_mode<synchronous>, transform_indices = @transform_5, window_bounds = array<i64: 1, 128>}, {pipeline_mode = #tpu.pipeline_mode<synchronous>, transform_indices = @transform_6, window_bounds = array<i64: 128, 128>}, {pipeline_mode = #tpu.pipeline_mode<synchronous>, transform_indices = @transform_7, window_bounds = array<i64: 1, 128>}, {transform_indices = @transform_8, window_bounds = array<i64: 1, 128>}]} {
    %c0 = arith.constant 0 : index
    %c0_0 = arith.constant 0 : index
    %0 = vector.load %arg1[%c0, %c0_0] : memref<8x128xbf16, #tpu.memory_space<vmem>>, vector<8x128xbf16>
    %c0_1 = arith.constant 0 : index
    %c0_2 = arith.constant 0 : index
    %1 = vector.load %arg3[%c0_1, %c0_2] : memref<128x128xbf16, #tpu.memory_space<vmem>>, vector<128x128xbf16>
    %cst = arith.constant dense<0.000000e+00> : vector<8x128xf32>
    %2 = tpu.matmul %0, %1, %cst {dimension_numbers = #tpu.dot_dimension_numbers<[1], [0], [0], [1], [0, 0, 1, 1], [], []>} : vector<8x128xbf16>, vector<128x128xbf16>, vector<8x128xf32> -> vector<8x128xf32>
    %c0_3 = arith.constant 0 : index
    %c0_4 = arith.constant 0 : index
    %3 = vector.load %arg4[%c0_3, %c0_4] : memref<1x128xf32, #tpu.memory_space<vmem>>, vector<1x128xf32>
    %4 = vector.broadcast %3 : vector<1x128xf32> to vector<8x128xf32>
    %5 = arith.addf %2, %4 : vector<8x128xf32>
    %cst_5 = arith.constant 0.000000e+00 : f32
    %6 = vector.broadcast %cst_5 : f32 to vector<8x128xf32>
    %7 = arith.maximumf %5, %6 : vector<8x128xf32>
    %8 = arith.truncf %7 : vector<8x128xf32> to vector<8x128xbf16>
    %c0_6 = arith.constant 0 : index
    %c0_7 = arith.constant 0 : index
    %9 = vector.load %arg5[%c0_6, %c0_7] : memref<128x128xbf16, #tpu.memory_space<vmem>>, vector<128x128xbf16>
    %cst_8 = arith.constant dense<0.000000e+00> : vector<8x128xf32>
    %10 = tpu.matmul %8, %9, %cst_8 {dimension_numbers = #tpu.dot_dimension_numbers<[1], [0], [0], [1], [0, 0, 1, 1], [], []>} : vector<8x128xbf16>, vector<128x128xbf16>, vector<8x128xf32> -> vector<8x128xf32>
    %c0_9 = arith.constant 0 : index
    %c0_10 = arith.constant 0 : index
    %11 = vector.load %arg6[%c0_9, %c0_10] : memref<1x128xf32, #tpu.memory_space<vmem>>, vector<1x128xf32>
    %12 = vector.broadcast %11 : vector<1x128xf32> to vector<8x128xf32>
    %13 = arith.addf %10, %12 : vector<8x128xf32>
    %cst_11 = arith.constant 0.000000e+00 : f32
    %14 = vector.broadcast %cst_11 : f32 to vector<8x128xf32>
    %15 = arith.maximumf %13, %14 : vector<8x128xf32>
    %16 = arith.truncf %15 : vector<8x128xf32> to vector<8x128xbf16>
    %c0_12 = arith.constant 0 : index
    %c0_13 = arith.constant 0 : index
    %17 = vector.load %arg7[%c0_12, %c0_13] : memref<128x128xbf16, #tpu.memory_space<vmem>>, vector<128x128xbf16>
    %cst_14 = arith.constant dense<0.000000e+00> : vector<8x128xf32>
    %18 = tpu.matmul %16, %17, %cst_14 {dimension_numbers = #tpu.dot_dimension_numbers<[1], [0], [0], [1], [0, 0, 1, 1], [], []>} : vector<8x128xbf16>, vector<128x128xbf16>, vector<8x128xf32> -> vector<8x128xf32>
    %c0_15 = arith.constant 0 : index
    %c0_16 = arith.constant 0 : index
    %19 = vector.load %arg8[%c0_15, %c0_16] : memref<1x128xf32, #tpu.memory_space<vmem>>, vector<1x128xf32>
    %20 = vector.broadcast %19 : vector<1x128xf32> to vector<8x128xf32>
    %21 = arith.addf %18, %20 : vector<8x128xf32>
    %cst_17 = arith.constant dense<0xFF800000> : vector<8xf32>
    %22 = vector.multi_reduction <maximumf>, %21, %cst_17 [1] : vector<8x128xf32> to vector<8xf32>
    %23 = vector.shape_cast %22 : vector<8xf32> to vector<8x1xf32>
    %24 = vector.broadcast %23 : vector<8x1xf32> to vector<8x128xf32>
    %25 = arith.subf %21, %24 : vector<8x128xf32>
    %26 = math.exp %25 : vector<8x128xf32>
    %cst_18 = arith.constant dense<0.000000e+00> : vector<8xf32>
    %27 = vector.multi_reduction <add>, %26, %cst_18 [1] : vector<8x128xf32> to vector<8xf32>
    %28 = vector.shape_cast %27 : vector<8xf32> to vector<8x1xf32>
    %29 = math.log %28 : vector<8x1xf32>
    %30 = arith.addf %23, %29 : vector<8x1xf32>
    %31 = tpu.iota {dimensions = array<i32: 1>} : vector<8x128xi32>
    %c0_19 = arith.constant 0 : index
    %c0_20 = arith.constant 0 : index
    %32 = vector.load %arg2[%c0_19, %c0_20] : memref<8x1xi32, #tpu.memory_space<vmem>>, vector<8x1xi32>
    %33 = vector.broadcast %32 : vector<8x1xi32> to vector<8x128xi32>
    %34 = arith.cmpi eq, %31, %33 : vector<8x128xi32>
    %35 = arith.extui %34 : vector<8x128xi1> to vector<8x128xi32>
    %36 = arith.sitofp %35 : vector<8x128xi32> to vector<8x128xf32>
    %37 = arith.mulf %21, %36 : vector<8x128xf32>
    %cst_21 = arith.constant dense<0.000000e+00> : vector<8xf32>
    %38 = vector.multi_reduction <add>, %37, %cst_21 [1] : vector<8x128xf32> to vector<8xf32>
    %39 = vector.shape_cast %38 : vector<8xf32> to vector<8x1xf32>
    %40 = arith.subf %30, %39 : vector<8x1xf32>
    %c8_i32 = arith.constant 8 : i32
    %41 = arith.muli %arg0, %c8_i32 : i32
    %42 = tpu.iota {dimensions = array<i32: 0>} : vector<8x1xi32>
    %43 = vector.broadcast %41 : i32 to vector<8x1xi32>
    %44 = arith.addi %43, %42 : vector<8x1xi32>
    %c8_i32_22 = arith.constant 8 : i32
    %45 = vector.broadcast %c8_i32_22 : i32 to vector<8x1xi32>
    %46 = arith.cmpi slt, %44, %45 : vector<8x1xi32>
    %47 = arith.extui %46 : vector<8x1xi1> to vector<8x1xi32>
    %48 = arith.sitofp %47 : vector<8x1xi32> to vector<8x1xf32>
    %49 = arith.mulf %40, %48 : vector<8x1xf32>
    %50 = vector.shape_cast %49 : vector<8x1xf32> to vector<1x8x1xf32>
    %cst_23 = arith.constant dense<0.000000e+00> : vector<1xf32>
    %51 = vector.multi_reduction <add>, %50, %cst_23 [1, 2] : vector<1x8x1xf32> to vector<1xf32>
    %52 = vector.shape_cast %51 : vector<1xf32> to vector<1x1x1xf32>
    %53 = vector.extract %52[0, 0, 0] : f32 from vector<1x1x1xf32>
    %54 = tpu.iota {dimensions = array<i32: 1>} : vector<1x128xi32>
    %c0_i32 = arith.constant 0 : i32
    %55 = vector.broadcast %c0_i32 : i32 to vector<1x128xi32>
    %56 = arith.cmpi eq, %54, %55 : vector<1x128xi32>
    %cst_24 = arith.constant 0.000000e+00 : f32
    %57 = vector.broadcast %53 : f32 to vector<1x128xf32>
    %58 = vector.broadcast %cst_24 : f32 to vector<1x128xf32>
    %59 = arith.select %56, %57, %58 : vector<1x128xi1>, vector<1x128xf32>
    %c0_25 = arith.constant 0 : index
    %c0_26 = arith.constant 0 : index
    %60 = vector.load %arg9[%c0_25, %c0_26] : memref<1x128xf32, #tpu.memory_space<vmem>>, vector<1x128xf32>
    tpu.vector_store %arg9[%c0_25, %c0_26], %59 {strides = array<i32>} : memref<1x128xf32, #tpu.memory_space<vmem>>, vector<1x128xf32>,
    return
  }
  func.func @transform_0(%arg0: i32) -> (i32, i32) {
    %c0_i32 = arith.constant 0 : i32
    %c0_i32_0 = arith.constant 0 : i32
    return %arg0, %c0_i32 : i32, i32
  }
  func.func @transform_1(%arg0: i32) -> (i32, i32) {
    %c0_i32 = arith.constant 0 : i32
    %c0_i32_0 = arith.constant 0 : i32
    return %arg0, %c0_i32 : i32, i32
  }
  func.func @transform_2(%arg0: i32) -> (i32, i32) {
    %c0_i32 = arith.constant 0 : i32
    %c0_i32_0 = arith.constant 0 : i32
    %c0_i32_1 = arith.constant 0 : i32
    return %c0_i32, %c0_i32_0 : i32, i32
  }
  func.func @transform_3(%arg0: i32) -> (i32, i32) {
    %c0_i32 = arith.constant 0 : i32
    %c0_i32_0 = arith.constant 0 : i32
    %c0_i32_1 = arith.constant 0 : i32
    return %c0_i32, %c0_i32_0 : i32, i32
  }
  func.func @transform_4(%arg0: i32) -> (i32, i32) {
    %c0_i32 = arith.constant 0 : i32
    %c0_i32_0 = arith.constant 0 : i32
    %c0_i32_1 = arith.constant 0 : i32
    return %c0_i32, %c0_i32_0 : i32, i32
  }
  func.func @transform_5(%arg0: i32) -> (i32, i32) {
    %c0_i32 = arith.constant 0 : i32
    %c0_i32_0 = arith.constant 0 : i32
    %c0_i32_1 = arith.constant 0 : i32
    return %c0_i32, %c0_i32_0 : i32, i32
  }
  func.func @transform_6(%arg0: i32) -> (i32, i32) {
    %c0_i32 = arith.constant 0 : i32
    %c0_i32_0 = arith.constant 0 : i32
    %c0_i32_1 = arith.constant 0 : i32
    return %c0_i32, %c0_i32_0 : i32, i32
  }
  func.func @transform_7(%arg0: i32) -> (i32, i32) {
    %c0_i32 = arith.constant 0 : i32
    %c0_i32_0 = arith.constant 0 : i32
    %c0_i32_1 = arith.constant 0 : i32
    return %c0_i32, %c0_i32_0 : i32, i32
  }
  func.func @transform_8(%arg0: i32) -> (i32, i32) {
    %c0_i32 = arith.constant 0 : i32
    %c0_i32_0 = arith.constant 0 : i32
    return %arg0, %c0_i32 : i32, i32
  }
}

</mosaic_0001>

<bundles_post_ra>
// kernel: tpu_custom_call.1
= control target key start
LH: loop header
LB: loop body
LE: loop exit
PB: predicated region body
PF: predicated region fallthrough
CT: control target
= control target key end

     0   :  { %13 = vsyncpa [#allocation3], 0  ;;  %s886_s0 = inlined_call_operand.vmem [shape: bf16[8,128], index: 0, kind: input, shape index: {}]   ;;  %s887_s1 = inlined_call_operand.vmem [shape: s32[8,1], index: 1, kind: input, shape index: {}]   ;;  %s888_s2 = inlined_call_operand.hbm [shape: bf16[128,128], index: 2, kind: input, shape index: {}]   ;;  %s889_s3 = inlined_call_operand.vmem [shape: f32[1,128], index: 3, kind: input, shape index: {}]   ;;  %s890_s4 = inlined_call_operand.hbm [shape: bf16[128,128], index: 4, kind: input, shape index: {}]   ;;  %s891_s5 = inlined_call_operand.vmem [shape: f32[1,128], index: 5, kind: input, shape index: {}]   ;;  %s892_s6 = inlined_call_operand.hbm [shape: bf16[128,128], index: 6, kind: input, shape index: {}]   ;;  %s893_s7 = inlined_call_operand.vmem [shape: f32[1,128], index: 7, kind: input, shape index: {}]   ;;  %s894_s8 = inlined_call_operand.hbm [shape: f32[1,128], index: 8, kind: output, shape index: {}]  }
   0x1   :  { %14 = vsyncpa [#allocation6], 0 }
   0x2   :  { %15 = vsyncpa [#allocation4], 0  ;;  %s722_s27 = smov [#allocation5]   ;;  %s723_s29 = smov [#allocation2]  }
   0x3   :  { %s39_s28 = sshll.u32 %s722_s27, 4  ;;  %s25_s30 = sshll.u32 %s723_s29, 4  ;;  %s40_s28 = int_to_ptr.vmem [resolvable:$true] %s39_s28  ;;  %s776_s30 = int_to_ptr.vmem [resolvable:$true] %s25_s30 }
   0x4   :  { %s628_s11 = scalar_lea.hbm %s890_s4, 1024 }
   0x5   :  { %p629_p0 = scmp.ne.s32.totalorder %s890_s4, %s628_s11  ;;  %p632_p1 = scmp.lt.u32.totalorder %s628_s11, %s890_s4 }
   0x7   :  { %p634_p2 = pnand %p632_p1, %p629_p0 }
   0x9   :  { %637 = shalt.err (!%p634_p2)
}
   0xa   :  { %s638_s16 = scalar_lea.vmem %s40_s28, 1024  ;;  %p643_p4 = scmp.lt.s32.totalorder %s40_s28, %s40_s28 }
   0xb   :  { %p639_p3 = scmp.ne.s32.totalorder %s40_s28, %s638_s16  ;;  %p644_p5 = scmp.lt.s32.totalorder %s638_s16, %s638_s16 }
   0xd   :  { %p645_p6 = por %p644_p5, %p643_p4 }
   0xf   :  { %p646_p7 = pnand %p645_p6, %p639_p3 }
  0x11   :  { %649 = shalt.err (!%p646_p7)
}
  0x12   :  { %s724_s17 = smov 64   ;;  %s725_s18 = smov 4  }
  0x13   :  { %45 = dma.hbm_to_vmem [thread:$0]  %s890_s4, 1024, %s40_s28, [#allocation6], %s724_s17, %s724_s17, %s725_s18  }
  0x14   :  { %s650_s23 = scalar_lea.hbm %s888_s2, 1024 }
  0x15   :  { %p651_p8 = scmp.ne.s32.totalorder %s888_s2, %s650_s23  ;;  %p654_p9 = scmp.lt.u32.totalorder %s650_s23, %s888_s2 }
  0x17   :  { %p656_p10 = pnand %p654_p9, %p651_p8 }
  0x19   :  { %659 = shalt.err (!%p656_p10)
}
  0x1a   :  { %s660_s29 = scalar_lea.vmem %s776_s30, 1024  ;;  %p665_p12 = scmp.lt.s32.totalorder %s776_s30, %s776_s30 }
  0x1b   :  { %p661_p11 = scmp.ne.s32.totalorder %s776_s30, %s660_s29  ;;  %p666_p13 = scmp.lt.s32.totalorder %s660_s29, %s660_s29 }
  0x1d   :  { %p667_p0 = por %p666_p13, %p665_p12 }
  0x1f   :  { %p668_p1 = pnand %p667_p0, %p661_p11 }
  0x21   :  { %671 = shalt.err (!%p668_p1)
}
  0x22   :  { %31 = dma.hbm_to_vmem [thread:$0]  %s888_s2, 1024, %s776_s30, [#allocation3], %s724_s17, %s724_s17, %s725_s18  }
  0x23   :  { %s726_s9 = smov [#allocation7]   ;;  %s672_s13 = scalar_lea.hbm %s892_s6, 1024 }
  0x24   :  { %s53_s10 = sshll.u32 %s726_s9, 4  ;;  %p673_p2 = scmp.ne.s32.totalorder %s892_s6, %s672_s13  ;;  %s54_s10 = int_to_ptr.vmem [resolvable:$true] %s53_s10 }
  0x25   :  { %p676_p3 = scmp.lt.u32.totalorder %s672_s13, %s892_s6 }
  0x27   :  { %p678_p4 = pnand %p676_p3, %p673_p2 }
  0x29   :  { %681 = shalt.err (!%p678_p4)
}
  0x2a   :  { %s682_s20 = scalar_lea.vmem %s54_s10, 1024  ;;  %p687_p6 = scmp.lt.s32.totalorder %s54_s10, %s54_s10 }
  0x2b   :  { %p683_p5 = scmp.ne.s32.totalorder %s54_s10, %s682_s20  ;;  %p688_p7 = scmp.lt.s32.totalorder %s682_s20, %s682_s20 }
  0x2d   :  { %p689_p8 = por %p688_p7, %p687_p6 }
  0x2f   :  { %p690_p9 = pnand %p689_p8, %p683_p5 }
  0x31   :  { %693 = shalt.err (!%p690_p9)
}
  0x32   :  { %59 = dma.hbm_to_vmem [thread:$0]  %s892_s6, 1024, %s54_s10, [#allocation6], %s724_s17, %s724_s17, %s725_s18  }
  0x33   :  { %716 = dma.done.wait [#allocation3], 1024  }
  0x34   :  { %717 = vsyncadd [#allocation3], 4294966272 }
  0x35   :  { %718 = dma.done.wait [#allocation6], 2048  }
  0x36   :  { %719 = vsyncadd [#allocation6], 4294965248  ;;  %v727_v0 = vmov 0.0   ;;  %vm728_vm0 = vmmov 0   ;;  %v600_v1 = vld [vmem:[#allocation2] sm:$0xff]   ;;  %v601_v2 = vld [vmem:[#allocation2 + $0x8] sm:$0xff]   ;;  %v420_v53 = vlaneseq }
  0x37   :  { %528 = vmatprep.subr.bf16.mxu0 %v727_v0  ;;  %544 = vmatprep.mubr.msk.bf16.mxu0 %vm728_vm0, %v727_v0  ;;  %v602_v3 = vld [vmem:[#allocation2 + $0x10] sm:$0xff]   ;;  %v608_v4 = vld [vmem:[#allocation5] sm:$0xff]   ;;  %v603_v5 = vld [vmem:[#allocation2 + $0x18] sm:$0xff]   ;;  %v729_v42 = vmov 0   ;;  %vm442_vm2 = vcmask 7168  }
  0x38   :  { %548 = vmatprep.subr.bf16.mxu1 %v727_v0  ;;  %564 = vmatprep.mubr.msk.bf16.mxu1 %vm728_vm0, %v727_v0  ;;  %v609_v6 = vld [vmem:[#allocation5 + $0x8] sm:$0xff]   ;;  %v604_v7 = vld [vmem:[#allocation2 + $0x20] sm:$0xff]   ;;  %v610_v8 = vld [vmem:[#allocation5 + $0x10] sm:$0xff]   ;;  %v421_v54 = vand.u32 127, %v420_v53 }
  0x39   :  { %529 = vmatpush3.bf16.msra.mxu0 %v600_v1  ;;  %549 = vmatpush3.bf16.msra.mxu1 %v608_v4  ;;  %v605_v9 = vld [vmem:[#allocation2 + $0x28] sm:$0xff]   ;;  %v611_v10 = vld [vmem:[#allocation5 + $0x18] sm:$0xff]   ;;  %v606_v11 = vld [vmem:[#allocation2 + $0x30] sm:$0xff]  }
  0x3a   :  { %530 = vmatprep.subr.bf16.mxu0 %v727_v0  ;;  %550 = vmatprep.subr.bf16.mxu1 %v727_v0  ;;  %v612_v12 = vld [vmem:[#allocation5 + $0x20] sm:$0xff]   ;;  %v607_v13 = vld [vmem:[#allocation2 + $0x38] sm:$0xff]   ;;  %v613_v14 = vld [vmem:[#allocation5 + $0x28] sm:$0xff]   ;;  %vm453_vm3 = vcmp.eq.s32.totalorder %v421_v54, 0 }
  0x3b   :  { %v72_v15 = vld [vmem:[%s886_s0] sm:$0xf]  ;;  %v614_v16 = vld [vmem:[#allocation5 + $0x30] sm:$0xff]   ;;  %v615_v17 = vld [vmem:[#allocation5 + $0x38] sm:$0xff]   ;;  %599 = vset.pattern.permute.xlu0 %v729_v42 }
  0x3c   :  { %v616_v18 = vld [vmem:[#allocation7] sm:$0xff]   ;;  %v617_v19 = vld [vmem:[#allocation7 + $0x8] sm:$0xff]   ;;  %v618_v20 = vld [vmem:[#allocation7 + $0x10] sm:$0xff]  }
  0x3d   :  { %531 = vmatpush3.bf16.msra.mxu0 %v601_v2  ;;  %551 = vmatpush3.bf16.msra.mxu1 %v609_v6  ;;  %v619_v21 = vld [vmem:[#allocation7 + $0x18] sm:$0xff]   ;;  %v620_v22 = vld [vmem:[#allocation7 + $0x20] sm:$0xff]   ;;  %v621_v23 = vld [vmem:[#allocation7 + $0x28] sm:$0xff]  }
  0x3e   :  { %532 = vmatprep.subr.bf16.mxu0 %v727_v0  ;;  %552 = vmatprep.subr.bf16.mxu1 %v727_v0  ;;  %v473_v24 = vld [vmem:[%s889_s3] ss:$0 sm:$0xff]  ;;  %v622_v32 = vld [vmem:[#allocation7 + $0x30] sm:$0xff]   ;;  %v623_v33 = vld [vmem:[#allocation7 + $0x38] sm:$0xff]  }
  0x3f   :  { %v482_v34 = vld [vmem:[%s891_s5] ss:$0 sm:$0xff] }
  0x40   :  { %v491_v43 = vld [vmem:[%s893_s7] ss:$0 sm:$0xff] }
  0x41   :  { %533 = vmatpush3.bf16.msra.mxu0 %v602_v3  ;;  %553 = vmatpush3.bf16.msra.mxu1 %v610_v8  ;;  %v422_v49 = vld [vmem:[%s887_s1] sm:$0xff]  ;;  %s730_s1 = smov [#allocation8]  }
  0x42   :  { %534 = vmatprep.subr.bf16.mxu0 %v727_v0  ;;  %554 = vmatprep.subr.bf16.mxu1 %v727_v0  ;;  %s463_s7 = sshll.u32 %s730_s1, 4  ;;  %s464_s7 = int_to_ptr.vmem [resolvable:$true] %s463_s7 }
  0x43   :  { %s694_s26 = scalar_lea.vmem %s464_s7, 16  ;;  %s698_s27 = scalar_lea.vmem %s464_s7, 32 }
  0x44   :  { %p695_p10 = scmp.ne.s32.totalorder %s464_s7, %s694_s26  ;;  %p699_p11 = scmp.lt.s32.totalorder %s464_s7, %s464_s7 }
  0x45   :  { %535 = vmatpush3.bf16.msra.mxu0 %v603_v5  ;;  %555 = vmatpush3.bf16.msra.mxu1 %v611_v10  ;;  %p700_p12 = scmp.lt.s32.totalorder %s698_s27, %s694_s26 }
  0x46   :  { %536 = vmatprep.subr.bf16.mxu0 %v727_v0  ;;  %556 = vmatprep.subr.bf16.mxu1 %v727_v0 }
  0x47   :  { %p701_p13 = por %p700_p12, %p699_p11 }
  0x49   :  { %537 = vmatpush3.bf16.msra.mxu0 %v604_v7  ;;  %557 = vmatpush3.bf16.msra.mxu1 %v612_v12  ;;  %p702_p0 = pnand %p701_p13, %p695_p10 }
  0x4a   :  { %538 = vmatprep.subr.bf16.mxu0 %v727_v0  ;;  %558 = vmatprep.subr.bf16.mxu1 %v727_v0 }
  0x4d   :  { %539 = vmatpush3.bf16.msra.mxu0 %v605_v9  ;;  %559 = vmatpush3.bf16.msra.mxu1 %v613_v14 }
  0x4e   :  { %540 = vmatprep.subr.bf16.mxu0 %v727_v0  ;;  %560 = vmatprep.subr.bf16.mxu1 %v727_v0 }
  0x51   :  { %541 = vmatpush3.bf16.msra.mxu0 %v606_v11  ;;  %561 = vmatpush3.bf16.msra.mxu1 %v614_v16 }
  0x52   :  { %542 = vmatprep.subr.bf16.mxu0 %v727_v0  ;;  %562 = vmatprep.subr.bf16.mxu1 %v727_v0 }
  0x55   :  { %543 = vmatpush3.bf16.msra.mxu0 %v607_v13  ;;  %563 = vmatpush3.bf16.msra.mxu1 %v615_v17 }
  0x56   :  { %568 = vmatprep.subr.bf16.mxu0 %v727_v0 }
  0x58   :  { %545 = vmatmul.mubr.bf16.vlgmr.msra.gmra.mrb[0].mxu0 %v72_v15 }
  0x59   :  { %584 = vmatprep.mubr.msk.bf16.mxu0 %vm728_vm0, %v727_v0  ;;  %569 = vmatpush3.bf16.msra.mxu0 %v616_v18 }
  0x5a   :  { %570 = vmatprep.subr.bf16.mxu0 %v727_v0 }
  0x5d   :  { %571 = vmatpush3.bf16.msra.mxu0 %v617_v19 }
  0x5e   :  { %572 = vmatprep.subr.bf16.mxu0 %v727_v0 }
  0x61   :  { %573 = vmatpush3.bf16.msra.mxu0 %v618_v20 }
  0x62   :  { %574 = vmatprep.subr.bf16.mxu0 %v727_v0 }
  0x65   :  { %575 = vmatpush3.bf16.msra.mxu0 %v619_v21 }
  0x66   :  { %576 = vmatprep.subr.bf16.mxu0 %v727_v0 }
  0x69   :  { %577 = vmatpush3.bf16.msra.mxu0 %v620_v22 }
  0x6a   :  { %578 = vmatprep.subr.bf16.mxu0 %v727_v0 }
  0x6d   :  { %579 = vmatpush3.bf16.msra.mxu0 %v621_v23 }
  0x6e   :  { %580 = vmatprep.subr.bf16.mxu0 %v727_v0 }
  0x71   :  { %581 = vmatpush3.bf16.msra.mxu0 %v622_v32 }
  0x72   :  { %582 = vmatprep.subr.bf16.mxu0 %v727_v0 }
  0x75   :  { %583 = vmatpush3.bf16.msra.mxu0 %v623_v33 }
 0x12b   :  { %v178_v25 = vpop.f32.mrb[0].mxu0 }
 0x12c   :  { %v179_v26 = vadd.f32 %v473_v24, %v178_v25  ;;  %v546_v27 = vpop.f32.mrb[1].mxu0 }
 0x12d   :  { %v181_v28 = vpop.f32.mrb[2].mxu0 }
 0x12e   :  { %v184_v29 = vmax.f32 %v179_v26, 0.0  ;;  %v547_v30 = vpop.f32.mrb[3].mxu0 }
 0x130   :  { %v185_v31 = vpack.c.bf16 %v184_v29, %v184_v29 }
 0x132   :  { %565 = vmatmul.mubr.bf16.vlgmr.msra.gmra.mrb[0].mxu1 %v185_v31 }
 0x205   :  { %v291_v35 = vpop.f32.mrb[0].mxu1 }
 0x206   :  { %v292_v36 = vadd.f32 %v482_v34, %v291_v35  ;;  %v566_v37 = vpop.f32.mrb[1].mxu1 }
 0x207   :  { %v294_v38 = vpop.f32.mrb[2].mxu1 }
 0x208   :  { %v297_v39 = vmax.f32 %v292_v36, 0.0  ;;  %v567_v40 = vpop.f32.mrb[3].mxu1 }
 0x20a   :  { %v298_v41 = vpack.c.bf16 %v297_v39, %v297_v39 }
 0x20c   :  { %585 = vmatmul.mubr.bf16.vlgmr.msra.gmra.mrb[4].mxu0 %v298_v41 }
 0x2df   :  { %v404_v44 = vpop.f32.mrb[4].mxu0 }
 0x2e0   :  { %v405_v45 = vadd.f32 %v491_v43, %v404_v44  ;;  %v586_v46 = vpop.f32.mrb[5].mxu0 }
 0x2e1   :  { %v407_v47 = vpop.f32.mrb[6].mxu0 }
 0x2e2   :  { %410 = vmax.xlane.f32.xlu0 %v405_v45  ;;  %v587_v48 = vpop.f32.mrb[7].mxu0 }
 0x2f8   :  { %424 = vperm.xlu0 %599, %v422_v49  }
 0x36f   :  { %v411_v50 = vpop.xlane.xlu0 %410 }
 0x370   :  { %v412_v51 = vsub.f32 %v405_v45, %v411_v50 }
 0x372   :  { %v413_v52 = vmul.f32 1.442695, %v412_v51 }
 0x374   :  { %624 = vpow2.f32 %v413_v52 }
 0x377   :  { %v425_v55 = vpop.permute.xlu0 %424 }
 0x378   :  { %vm426_vm1 = vcmp.eq.s32.totalorder %v421_v54, %v425_v55 }
 0x379   :  { %v500_v57 = vsel %vm426_vm1, 1.0, %v727_v0 }
 0x37a   :  { %v429_v58 = vmul.f32 %v500_v57, %v405_v45 }
 0x37e   :  { %v625_v56 = vpop.eup %624 }
 0x37f   :  { %415 = vadd.xlane.f32.xlu1 %v625_v56 }
 0x383   :  { %430 = vadd.xlane.f32.xlu1 %v429_v58 }
 0x40c   :  { %v416_v59 = vpop.xlane.xlu1 %415 }
 0x40d   :  { %626 = vlog2.f32 %v416_v59 }
 0x410   :  { %v431_v63 = vpop.xlane.xlu1 %430 }
 0x417   :  { %v627_v60 = vpop.eup %626 }
 0x418   :  { %v418_v61 = vmul.f32 0.6931472, %v627_v60 }
 0x41a   :  { %v419_v62 = vadd.f32 %v418_v61, %v411_v50 }
 0x41c   :  { %v432_v1 = vsub.f32 %v419_v62, %v431_v63 }
 0x41e   :  { %v443_v2 = vsel %vm442_vm2, %v432_v1, 0.0 }
 0x41f   :  { %444 = vadd.xlane.f32.xlu1 %v443_v2 }
 0x4ac   :  { %v445_v3 = vpop.xlane.xlu1 %444 }
 0x4ad   :  { %v446_v4 = vrot.slane %v445_v3, 4 }
 0x4af   :  { %v447_v5 = vadd.f32 %v446_v4, %v445_v3 }
 0x4b1   :  { %v448_v6 = vrot.slane %v447_v5, 2 }
 0x4b3   :  { %v449_v7 = vadd.f32 %v448_v6, %v447_v5 }
 0x4b5   :  { %v450_v8 = vrot.slane %v449_v7, 1 }
 0x4b7   :  { %v451_v0 = vadd.f32 %v450_v8, %v449_v7 }
 0x4b9   :  { %588 = vpush %v451_v0 }
 0x4ea   :  { %s589_s25 = spop %588 }
 0x4eb   :  { %v454_v9 = vstv %s589_s25 }
 0x4ec   :  { %v455_v10 = vsel %vm453_vm3, %v454_v9, 0.0 }
 0x4ed   :  { %456 = vst [vmem:[#allocation8] sm:$0x1] %v455_v10 }
 0x4ee   :  { %705 = shalt.err (!%p702_p0)
}
 0x4ef   :  { %s706_s28 = scalar_lea.hbm %s894_s8, 16 }
 0x4f0   :  { %p707_p1 = scmp.ne.s32.totalorder %s894_s8, %s706_s28  ;;  %p710_p2 = scmp.lt.u32.totalorder %s706_s28, %s894_s8 }
 0x4f2   :  { %p712_p3 = pnand %p710_p2, %p707_p1 }
 0x4f4   :  { %715 = shalt.err (!%p712_p3)
}
 0x4f5   :  { %466 = dma.vmem_to_hbm [thread:$0]  %s464_s7, 16, %s894_s8, [#allocation4]  }
 0x4f6   :  { %720 = dma.done.wait [#allocation4], 16  }
 0x4f7   :  { %721 = vsyncadd [#allocation4], 4294967280 }
 0x4f8   :  { %470 = vsyncpa [#allocation3], 1 }
 0x4f9   :  { %471 = vsyncpa [#allocation6], 1 }
 0x4fa   :  { %472 = vsyncpa [#allocation4], 1 }

</bundles_post_ra>
